<compile_context>
chip_gen: v7x
topology: tpu7x:2x2x1
jax: 0.10.0
libtpu: 0.0.40
codegen_flags: <defaults>
</compile_context>

<pallas_src>
import jax
import jax.numpy as jnp
from jax.experimental import pallas as pl
from jax.experimental.pallas import tpu as pltpu


# ----------------------------------------------------------------------------
# Glue: densify gcn_norm (edge-list scatter -> dense normalized adjacency).
# TODO(synk): gcn_norm's scatter_add / add_remaining_self_loops edge handling is
# data-dependent scatter with no clean BlockSpec expression; it is done in plain
# JAX and only the dense matmul hot path runs in the Pallas kernel.
# ----------------------------------------------------------------------------
def build_norm_adj(edge_index, edge_weight, num_nodes):
    src, dst = edge_index[0], edge_index[1]
    if edge_weight is None:
        edge_weight = jnp.ones((src.shape[0],), jnp.float32)
    # A[target, source] = w   (PyG flow source_to_target, aggr='add')
    a = jnp.zeros((num_nodes, num_nodes), jnp.float32).at[dst, src].add(edge_weight)
    # add self-loops with fill_value 1.0 (test edges are generated without self-loops)
    a = a + jnp.eye(num_nodes, dtype=jnp.float32)
    deg = a.sum(axis=1)                                   # scatter_add over col (targets)
    dinv = jnp.where(deg > 0, 1.0 / jnp.sqrt(deg), 0.0)   # deg^-0.5, inf -> 0
    return dinv[:, None] * a * dinv[None, :]


# ----------------------------------------------------------------------------
# Pallas kernel: whole forward hot path.
# Small model => single program, all operands VMEM-resident.
# ----------------------------------------------------------------------------
def sym_reg_kernel(x_ref,                       # [N, Fin]
                   a_ref,                       # [3N, N]  stacked normalized adjacencies
                   w1_ref,                      # [Fin, H]
                   w2_ref,                      # [3, H, Fout]        (lin2 split per branch)
                   b1_ref,                      # [1, H]
                   b2_ref,                      # [1, Fout]
                   gamma_ref, beta_ref,         # [3, 1, Fout]        BN affine per branch
                   wc_ref,                      # [3, Fout, Fpad]     Conv1d(k=1), lane-padded
                   bc_ref,                      # [1, Fpad]
                   o_ref):                      # [N, Fpad]           lane-dense output
    f32 = jnp.float32
    n = o_ref.shape[0]

    # ---- layer 1: project once, propagate all three branches in ONE matmul ----
    h0 = jnp.dot(x_ref[...], w1_ref[...], preferred_element_type=f32)          # [N, H]
    h_all = jnp.dot(a_ref[...], h0.astype(a_ref.dtype),
                    preferred_element_type=f32) + b1_ref[...]                  # [3N, H]
    h_all = jnp.maximum(h_all, 0.0)

    # ---- lin2 with split weights: z0 = sum_j relu(h_j) @ W2_j  (== cat(h) @ W2) ----
    z0 = jnp.dot(h_all[0:n], w2_ref[0], preferred_element_type=f32)            # [N, Fout]
    for j in range(1, 3):
        z0 = z0 + jnp.dot(h_all[j * n:(j + 1) * n], w2_ref[j],
                          preferred_element_type=f32)

    # ---- layer 2: ONE stacked propagation ----
    z_all = jnp.dot(a_ref[...], z0.astype(a_ref.dtype),
                    preferred_element_type=f32) + b2_ref[...]                  # [3N, Fout]

    # ---- per-branch BN (training batch stats, folded scale/shift) + Conv1d(k=1) ----
    # Per-branch block stats == stats over the corresponding columns of the
    # concatenated [N, 3*Fout] features, so this matches BatchNorm1d exactly.
    out = jnp.zeros((n, o_ref.shape[1]), f32)
    for j in range(3):
        q = z_all[j * n:(j + 1) * n]                                           # [N, Fout]
        mean = jnp.mean(q, axis=0, keepdims=True)
        cq = q - mean
        var = jnp.mean(cq * cq, axis=0, keepdims=True)         # biased var (training mode)
        scale = gamma_ref[j] * jax.lax.rsqrt(var + 1e-5)       # rsqrt -> EUP slot
        shift = beta_ref[j] - mean * scale
        zn = q * scale + shift                                                 # folded BN
        out = out + jnp.dot(zn, wc_ref[j], preferred_element_type=f32)         # [N, Fpad]
    # TODO(synk): BatchNorm running_mean/running_var updates are not produced
    # (only training-mode normalization, which is what forward() returns).
    o_ref[...] = out + bc_ref[...]


def sym_reg_forward(x, w1, w2t, a1, a2, a3, bias1, bias2, gamma, beta, wct, bc,
                    *, bf16_adjacency=False):
    n = x.shape[0]
    nhid = w1.shape[1]
    out_dim = bc.shape[0]
    fpad = ((out_dim + 127) // 128) * 128            # lane-dense padded output width

    # Stack the three adjacencies: one MXU weight push of h0/z0 per layer instead
    # of three, and 3x the M-rows against the 128/256-deep MXU.
    a_cat = jnp.concatenate([a1, a2, a3], axis=0)    # [3N, N]
    if bf16_adjacency:
        # v6e/v7x MXU is bf16-native and this halves the only O(N^2) operand.
        # Loosens the 1e-4 check -> gated behind this flag.
        a_cat = a_cat.astype(jnp.bfloat16)

    wc = wct.reshape(3, out_dim, out_dim)
    wc_pad = jnp.zeros((3, out_dim, fpad), jnp.float32).at[:, :, :out_dim].set(wc)
    bc_pad = jnp.zeros((1, fpad), jnp.float32).at[0, :out_dim].set(bc)

    operands = (
        x,
        a_cat,
        w1,
        w2t.reshape(3, nhid, out_dim),
        bias1.reshape(1, nhid),
        bias2.reshape(1, out_dim),
        gamma.reshape(3, 1, out_dim),
        beta.reshape(3, 1, out_dim),
        wc_pad,
        bc_pad,
    )

    # Raise the scoped-VMEM limit above v5e's 16 MiB default, keep headroom under
    # v7x's 64 MiB physical VMEM.
    op_bytes = sum(int(a.size) * a.dtype.itemsize for a in operands) + n * fpad * 4
    vmem_limit = int(min(max(4 * op_bytes, 32 << 20), 64 << 20))

    vmem = pl.BlockSpec(memory_space=pltpu.MemorySpace.VMEM)
    out_pad = pl.pallas_call(
        sym_reg_kernel,
        out_shape=jax.ShapeDtypeStruct((n, fpad), jnp.float32),
        in_specs=[vmem] * len(operands),
        out_specs=vmem,
        compiler_params=pltpu.CompilerParams(vmem_limit_bytes=vmem_limit),
    )(*operands)
    # Strip the lane padding outside the kernel.
    return out_pad[:, :out_dim]


# ----------------------------------------------------------------------------
# Pure-JAX reference (mirrors the PyTorch forward exactly) for validation.
# ----------------------------------------------------------------------------
def reference(x, w1, w2t, a1, a2, a3, bias1, bias2, gamma, beta, wct, bc):
    h0 = x @ w1
    x1 = a1 @ h0 + bias1[None, :]
    x2 = a2 @ h0 + bias1[None, :]
    x3 = a3 @ h0 + bias1[None, :]
    h = jnp.maximum(jnp.concatenate([x1, x2, x3], axis=-1), 0.0)
    z0 = h @ w2t
    z1 = a1 @ z0 + bias2[None, :]
    z2 = a2 @ z0 + bias2[None, :]
    z3 = a3 @ z0 + bias2[None, :]
    z = jnp.concatenate([z1, z2, z3], axis=-1)
    mean = z.mean(0, keepdims=True)
    var = ((z - mean) ** 2).mean(0, keepdims=True)
    zn = gamma[None, :] * (z - mean) / jnp.sqrt(var + 1e-5) + beta[None, :]
    return zn @ wct + bc[None, :]


if __name__ == "__main__":
    key = jax.random.PRNGKey(0)
    N, input_dim, nhid, out_dim, E = 64, 16, 32, 16, 128
    ks = jax.random.split(key, 16)

    x = jax.random.normal(ks[0], (N, input_dim), jnp.float32)

    def rand_edges(k, num_edges):
        k1, k2 = jax.random.split(k)
        src = jax.random.randint(k1, (num_edges,), 0, N)
        off = jax.random.randint(k2, (num_edges,), 1, N)
        dst = (src + off) % N            # guarantee no self-loops
        return jnp.stack([src, dst]).astype(jnp.int32)

    edge_index = rand_edges(ks[1], E)
    edge_in = rand_edges(ks[2], E)
    edge_out = rand_edges(ks[3], E)
    in_w = jax.random.uniform(ks[4], (E,), jnp.float32, 0.1, 1.0)
    out_w = jax.random.uniform(ks[5], (E,), jnp.float32, 0.1, 1.0)

    # Deterministic synthetic parameters (shapes from the module's __init__;
    # linear weights pre-transposed to [F_in, F_out], Conv1d weight to
    # [3*out_dim, out_dim]).
    w1 = jax.random.normal(ks[6], (input_dim, nhid), jnp.float32) / jnp.sqrt(input_dim)
    w2t = jax.random.normal(ks[7], (3 * nhid, out_dim), jnp.float32) / jnp.sqrt(3.0 * nhid)
    bias1 = 0.1 * jax.random.normal(ks[8], (nhid,), jnp.float32)
    bias2 = 0.1 * jax.random.normal(ks[9], (out_dim,), jnp.float32)
    gamma = 1.0 + 0.1 * jax.random.normal(ks[10], (3 * out_dim,), jnp.float32)
    beta = 0.1 * jax.random.normal(ks[11], (3 * out_dim,), jnp.float32)
    wct = jax.random.normal(ks[12], (3 * out_dim, out_dim), jnp.float32) / jnp.sqrt(3.0 * out_dim)
    bc = 0.1 * jax.random.normal(ks[13], (out_dim,), jnp.float32)

    # Densified, GCN-normalized adjacencies (glue, plain JAX).
    a1 = build_norm_adj(edge_index, None, N)
    a2 = build_norm_adj(edge_in, in_w, N)
    a3 = build_norm_adj(edge_out, out_w, N)

    # f32 path (default): bit-for-bit comparable with the reference at 1e-4.
    out = sym_reg_forward(x, w1, w2t, a1, a2, a3, bias1, bias2, gamma, beta, wct, bc)
    out = jax.block_until_ready(out)

    ref = reference(x, w1, w2t, a1, a2, a3, bias1, bias2, gamma, beta, wct, bc)
    assert out.shape == (N, out_dim)
    assert jnp.allclose(out, ref, atol=1e-4, rtol=1e-4), "mismatch vs reference"

    # bf16-adjacency path (v6e/v7x fast path): exercise compile/run only
    # (numerics intentionally looser, so no tight tolerance check here).
    out_bf16 = sym_reg_forward(x, w1, w2t, a1, a2, a3, bias1, bias2, gamma, beta, wct, bc,
                               bf16_adjacency=True)
    out_bf16 = jax.block_until_ready(out_bf16)
    assert out_bf16.shape == (N, out_dim)
    assert bool(jnp.all(jnp.isfinite(out_bf16)))

    print("KERNEL_OK")
</pallas_src>

<mosaic_0001>
module attributes {stable_mosaic.version = 11 : i64} {
  func.func @sym_reg_kernel(%arg0: memref<64x16xf32, #tpu.memory_space<vmem>>, %arg1: memref<192x64xf32, #tpu.memory_space<vmem>>, %arg2: memref<16x32xf32, #tpu.memory_space<vmem>>, %arg3: memref<3x32x16xf32, #tpu.memory_space<vmem>>, %arg4: memref<1x32xf32, #tpu.memory_space<vmem>>, %arg5: memref<1x16xf32, #tpu.memory_space<vmem>>, %arg6: memref<3x1x16xf32, #tpu.memory_space<vmem>>, %arg7: memref<3x1x16xf32, #tpu.memory_space<vmem>>, %arg8: memref<3x16x128xf32, #tpu.memory_space<vmem>>, %arg9: memref<1x128xf32, #tpu.memory_space<vmem>>, %arg10: memref<64x128xf32, #tpu.memory_space<vmem>>) attributes {dimension_semantics = [], scalar_prefetch = 0 : i64, scratch_operands = 0 : i64, tpu.core_type = #tpu.core_type<tc>} {
    %c0 = arith.constant 0 : index
    %c0_0 = arith.constant 0 : index
    %0 = vector.load %arg0[%c0, %c0_0] : memref<64x16xf32, #tpu.memory_space<vmem>>, vector<64x16xf32>
    %c0_1 = arith.constant 0 : index
    %c0_2 = arith.constant 0 : index
    %1 = vector.load %arg2[%c0_1, %c0_2] : memref<16x32xf32, #tpu.memory_space<vmem>>, vector<16x32xf32>
    %cst = arith.constant dense<0.000000e+00> : vector<64x32xf32>
    %2 = tpu.matmul %0, %1, %cst {dimension_numbers = #tpu.dot_dimension_numbers<[1], [0], [0], [1], [0, 0, 1, 1], [], []>} : vector<64x16xf32>, vector<16x32xf32>, vector<64x32xf32> -> vector<64x32xf32>
    %c0_3 = arith.constant 0 : index
    %c0_4 = arith.constant 0 : index
    %3 = vector.load %arg1[%c0_3, %c0_4] : memref<192x64xf32, #tpu.memory_space<vmem>>, vector<192x64xf32>
    %cst_5 = arith.constant dense<0.000000e+00> : vector<192x32xf32>
    %4 = tpu.matmul %3, %2, %cst_5 {dimension_numbers = #tpu.dot_dimension_numbers<[1], [0], [0], [1], [0, 0, 1, 1], [], []>} : vector<192x64xf32>, vector<64x32xf32>, vector<192x32xf32> -> vector<192x32xf32>
    %c0_6 = arith.constant 0 : index
    %c0_7 = arith.constant 0 : index
    %5 = vector.load %arg4[%c0_6, %c0_7] : memref<1x32xf32, #tpu.memory_space<vmem>>, vector<1x32xf32>
    %6 = vector.broadcast %5 : vector<1x32xf32> to vector<192x32xf32>
    %7 = arith.addf %4, %6 : vector<192x32xf32>
    %cst_8 = arith.constant 0.000000e+00 : f32
    %8 = vector.broadcast %cst_8 : f32 to vector<192x32xf32>
    %9 = arith.maximumf %7, %8 : vector<192x32xf32>
    %10 = vector.extract_strided_slice %9 {offsets = [0, 0], sizes = [64, 32], strides = [1, 1]} : vector<192x32xf32> to vector<64x32xf32>
    %c0_9 = arith.constant 0 : index
    %c0_10 = arith.constant 0 : index
    %c0_11 = arith.constant 0 : index
    %11 = vector.load %arg3[%c0_9, %c0_10, %c0_11] : memref<3x32x16xf32, #tpu.memory_space<vmem>>, vector<1x32x16xf32>
    %12 = vector.shape_cast %11 : vector<1x32x16xf32> to vector<32x16xf32>
    %cst_12 = arith.constant dense<0.000000e+00> : vector<64x16xf32>
    %13 = tpu.matmul %10, %12, %cst_12 {dimension_numbers = #tpu.dot_dimension_numbers<[1], [0], [0], [1], [0, 0, 1, 1], [], []>} : vector<64x32xf32>, vector<32x16xf32>, vector<64x16xf32> -> vector<64x16xf32>
    %14 = vector.extract_strided_slice %9 {offsets = [64, 0], sizes = [64, 32], strides = [1, 1]} : vector<192x32xf32> to vector<64x32xf32>
    %c1 = arith.constant 1 : index
    %c0_13 = arith.constant 0 : index
    %c0_14 = arith.constant 0 : index
    %15 = vector.load %arg3[%c1, %c0_13, %c0_14] : memref<3x32x16xf32, #tpu.memory_space<vmem>>, vector<1x32x16xf32>
    %16 = vector.shape_cast %15 : vector<1x32x16xf32> to vector<32x16xf32>
    %cst_15 = arith.constant dense<0.000000e+00> : vector<64x16xf32>
    %17 = tpu.matmul %14, %16, %cst_15 {dimension_numbers = #tpu.dot_dimension_numbers<[1], [0], [0], [1], [0, 0, 1, 1], [], []>} : vector<64x32xf32>, vector<32x16xf32>, vector<64x16xf32> -> vector<64x16xf32>
    %18 = arith.addf %13, %17 : vector<64x16xf32>
    %19 = vector.extract_strided_slice %9 {offsets = [128, 0], sizes = [64, 32], strides = [1, 1]} : vector<192x32xf32> to vector<64x32xf32>
    %c2 = arith.constant 2 : index
    %c0_16 = arith.constant 0 : index
    %c0_17 = arith.constant 0 : index
    %20 = vector.load %arg3[%c2, %c0_16, %c0_17] : memref<3x32x16xf32, #tpu.memory_space<vmem>>, vector<1x32x16xf32>
    %21 = vector.shape_cast %20 : vector<1x32x16xf32> to vector<32x16xf32>
    %cst_18 = arith.constant dense<0.000000e+00> : vector<64x16xf32>
    %22 = tpu.matmul %19, %21, %cst_18 {dimension_numbers = #tpu.dot_dimension_numbers<[1], [0], [0], [1], [0, 0, 1, 1], [], []>} : vector<64x32xf32>, vector<32x16xf32>, vector<64x16xf32> -> vector<64x16xf32>
    %23 = arith.addf %18, %22 : vector<64x16xf32>
    %c0_19 = arith.constant 0 : index
    %c0_20 = arith.constant 0 : index
    %24 = vector.load %arg1[%c0_19, %c0_20] : memref<192x64xf32, #tpu.memory_space<vmem>>, vector<192x64xf32>
    %cst_21 = arith.constant dense<0.000000e+00> : vector<192x16xf32>
    %25 = tpu.matmul %24, %23, %cst_21 {dimension_numbers = #tpu.dot_dimension_numbers<[1], [0], [0], [1], [0, 0, 1, 1], [], []>} : vector<192x64xf32>, vector<64x16xf32>, vector<192x16xf32> -> vector<192x16xf32>
    %c0_22 = arith.constant 0 : index
    %c0_23 = arith.constant 0 : index
    %26 = vector.load %arg5[%c0_22, %c0_23] : memref<1x16xf32, #tpu.memory_space<vmem>>, vector<1x16xf32>
    %27 = vector.broadcast %26 : vector<1x16xf32> to vector<192x16xf32>
    %28 = arith.addf %25, %27 : vector<192x16xf32>
    %cst_24 = arith.constant 0.000000e+00 : f32
    %29 = vector.broadcast %cst_24 : f32 to vector<64x128xf32>
    %30 = vector.extract_strided_slice %28 {offsets = [0, 0], sizes = [64, 16], strides = [1, 1]} : vector<192x16xf32> to vector<64x16xf32>
    %cst_25 = arith.constant dense<0.000000e+00> : vector<16xf32>
    %31 = vector.multi_reduction <add>, %30, %cst_25 [0] : vector<64x16xf32> to vector<16xf32>
    %32 = vector.shape_cast %31 : vector<16xf32> to vector<1x16xf32>
    %cst_26 = arith.constant 6.400000e+01 : f32
    %33 = vector.broadcast %cst_26 : f32 to vector<1x16xf32>
    %34 = arith.divf %32, %33 : vector<1x16xf32>
    %35 = vector.broadcast %34 : vector<1x16xf32> to vector<64x16xf32>
    %36 = arith.subf %30, %35 : vector<64x16xf32>
    %37 = arith.mulf %36, %36 : vector<64x16xf32>
    %cst_27 = arith.constant dense<0.000000e+00> : vector<16xf32>
    %38 = vector.multi_reduction <add>, %37, %cst_27 [0] : vector<64x16xf32> to vector<16xf32>
    %39 = vector.shape_cast %38 : vector<16xf32> to vector<1x16xf32>
    %cst_28 = arith.constant 6.400000e+01 : f32
    %40 = vector.broadcast %cst_28 : f32 to vector<1x16xf32>
    %41 = arith.divf %39, %40 : vector<1x16xf32>
    %c0_29 = arith.constant 0 : index
    %c0_30 = arith.constant 0 : index
    %c0_31 = arith.constant 0 : index
    %42 = vector.load %arg6[%c0_29, %c0_30, %c0_31] : memref<3x1x16xf32, #tpu.memory_space<vmem>>, vector<1x1x16xf32>
    %43 = vector.shape_cast %42 : vector<1x1x16xf32> to vector<1x16xf32>
    %cst_32 = arith.constant 9.99999974E-6 : f32
    %44 = vector.broadcast %cst_32 : f32 to vector<1x16xf32>
    %45 = arith.addf %41, %44 : vector<1x16xf32>
    %46 = math.rsqrt %45 : vector<1x16xf32>
    %47 = arith.mulf %43, %46 : vector<1x16xf32>
    %c0_33 = arith.constant 0 : index
    %c0_34 = arith.constant 0 : index
    %c0_35 = arith.constant 0 : index
    %48 = vector.load %arg7[%c0_33, %c0_34, %c0_35] : memref<3x1x16xf32, #tpu.memory_space<vmem>>, vector<1x1x16xf32>
    %49 = vector.shape_cast %48 : vector<1x1x16xf32> to vector<1x16xf32>
    %50 = arith.mulf %34, %47 : vector<1x16xf32>
    %51 = arith.subf %49, %50 : vector<1x16xf32>
    %52 = vector.broadcast %47 : vector<1x16xf32> to vector<64x16xf32>
    %53 = arith.mulf %30, %52 : vector<64x16xf32>
    %54 = vector.broadcast %51 : vector<1x16xf32> to vector<64x16xf32>
    %55 = arith.addf %53, %54 : vector<64x16xf32>
    %c0_36 = arith.constant 0 : index
    %c0_37 = arith.constant 0 : index
    %c0_38 = arith.constant 0 : index
    %56 = vector.load %arg8[%c0_36, %c0_37, %c0_38] : memref<3x16x128xf32, #tpu.memory_space<vmem>>, vector<1x16x128xf32>
    %57 = vector.shape_cast %56 : vector<1x16x128xf32> to vector<16x128xf32>
    %cst_39 = arith.constant dense<0.000000e+00> : vector<64x128xf32>
    %58 = tpu.matmul %55, %57, %cst_39 {dimension_numbers = #tpu.dot_dimension_numbers<[1], [0], [0], [1], [0, 0, 1, 1], [], []>} : vector<64x16xf32>, vector<16x128xf32>, vector<64x128xf32> -> vector<64x128xf32>
    %59 = arith.addf %29, %58 : vector<64x128xf32>
    %60 = vector.extract_strided_slice %28 {offsets = [64, 0], sizes = [64, 16], strides = [1, 1]} : vector<192x16xf32> to vector<64x16xf32>
    %cst_40 = arith.constant dense<0.000000e+00> : vector<16xf32>
    %61 = vector.multi_reduction <add>, %60, %cst_40 [0] : vector<64x16xf32> to vector<16xf32>
    %62 = vector.shape_cast %61 : vector<16xf32> to vector<1x16xf32>
    %cst_41 = arith.constant 6.400000e+01 : f32
    %63 = vector.broadcast %cst_41 : f32 to vector<1x16xf32>
    %64 = arith.divf %62, %63 : vector<1x16xf32>
    %65 = vector.broadcast %64 : vector<1x16xf32> to vector<64x16xf32>
    %66 = arith.subf %60, %65 : vector<64x16xf32>
    %67 = arith.mulf %66, %66 : vector<64x16xf32>
    %cst_42 = arith.constant dense<0.000000e+00> : vector<16xf32>
    %68 = vector.multi_reduction <add>, %67, %cst_42 [0] : vector<64x16xf32> to vector<16xf32>
    %69 = vector.shape_cast %68 : vector<16xf32> to vector<1x16xf32>
    %cst_43 = arith.constant 6.400000e+01 : f32
    %70 = vector.broadcast %cst_43 : f32 to vector<1x16xf32>
    %71 = arith.divf %69, %70 : vector<1x16xf32>
    %c1_44 = arith.constant 1 : index
    %c0_45 = arith.constant 0 : index
    %c0_46 = arith.constant 0 : index
    %72 = vector.load %arg6[%c1_44, %c0_45, %c0_46] : memref<3x1x16xf32, #tpu.memory_space<vmem>>, vector<1x1x16xf32>
    %73 = vector.shape_cast %72 : vector<1x1x16xf32> to vector<1x16xf32>
    %cst_47 = arith.constant 9.99999974E-6 : f32
    %74 = vector.broadcast %cst_47 : f32 to vector<1x16xf32>
    %75 = arith.addf %71, %74 : vector<1x16xf32>
    %76 = math.rsqrt %75 : vector<1x16xf32>
    %77 = arith.mulf %73, %76 : vector<1x16xf32>
    %c1_48 = arith.constant 1 : index
    %c0_49 = arith.constant 0 : index
    %c0_50 = arith.constant 0 : index
    %78 = vector.load %arg7[%c1_48, %c0_49, %c0_50] : memref<3x1x16xf32, #tpu.memory_space<vmem>>, vector<1x1x16xf32>
    %79 = vector.shape_cast %78 : vector<1x1x16xf32> to vector<1x16xf32>
    %80 = arith.mulf %64, %77 : vector<1x16xf32>
    %81 = arith.subf %79, %80 : vector<1x16xf32>
    %82 = vector.broadcast %77 : vector<1x16xf32> to vector<64x16xf32>
    %83 = arith.mulf %60, %82 : vector<64x16xf32>
    %84 = vector.broadcast %81 : vector<1x16xf32> to vector<64x16xf32>
    %85 = arith.addf %83, %84 : vector<64x16xf32>
    %c1_51 = arith.constant 1 : index
    %c0_52 = arith.constant 0 : index
    %c0_53 = arith.constant 0 : index
    %86 = vector.load %arg8[%c1_51, %c0_52, %c0_53] : memref<3x16x128xf32, #tpu.memory_space<vmem>>, vector<1x16x128xf32>
    %87 = vector.shape_cast %86 : vector<1x16x128xf32> to vector<16x128xf32>
    %cst_54 = arith.constant dense<0.000000e+00> : vector<64x128xf32>
    %88 = tpu.matmul %85, %87, %cst_54 {dimension_numbers = #tpu.dot_dimension_numbers<[1], [0], [0], [1], [0, 0, 1, 1], [], []>} : vector<64x16xf32>, vector<16x128xf32>, vector<64x128xf32> -> vector<64x128xf32>
    %89 = arith.addf %59, %88 : vector<64x128xf32>
    %90 = vector.extract_strided_slice %28 {offsets = [128, 0], sizes = [64, 16], strides = [1, 1]} : vector<192x16xf32> to vector<64x16xf32>
    %cst_55 = arith.constant dense<0.000000e+00> : vector<16xf32>
    %91 = vector.multi_reduction <add>, %90, %cst_55 [0] : vector<64x16xf32> to vector<16xf32>
    %92 = vector.shape_cast %91 : vector<16xf32> to vector<1x16xf32>
    %cst_56 = arith.constant 6.400000e+01 : f32
    %93 = vector.broadcast %cst_56 : f32 to vector<1x16xf32>
    %94 = arith.divf %92, %93 : vector<1x16xf32>
    %95 = vector.broadcast %94 : vector<1x16xf32> to vector<64x16xf32>
    %96 = arith.subf %90, %95 : vector<64x16xf32>
    %97 = arith.mulf %96, %96 : vector<64x16xf32>
    %cst_57 = arith.constant dense<0.000000e+00> : vector<16xf32>
    %98 = vector.multi_reduction <add>, %97, %cst_57 [0] : vector<64x16xf32> to vector<16xf32>
    %99 = vector.shape_cast %98 : vector<16xf32> to vector<1x16xf32>
    %cst_58 = arith.constant 6.400000e+01 : f32
    %100 = vector.broadcast %cst_58 : f32 to vector<1x16xf32>
    %101 = arith.divf %99, %100 : vector<1x16xf32>
    %c2_59 = arith.constant 2 : index
    %c0_60 = arith.constant 0 : index
    %c0_61 = arith.constant 0 : index
    %102 = vector.load %arg6[%c2_59, %c0_60, %c0_61] : memref<3x1x16xf32, #tpu.memory_space<vmem>>, vector<1x1x16xf32>
    %103 = vector.shape_cast %102 : vector<1x1x16xf32> to vector<1x16xf32>
    %cst_62 = arith.constant 9.99999974E-6 : f32
    %104 = vector.broadcast %cst_62 : f32 to vector<1x16xf32>
    %105 = arith.addf %101, %104 : vector<1x16xf32>
    %106 = math.rsqrt %105 : vector<1x16xf32>
    %107 = arith.mulf %103, %106 : vector<1x16xf32>
    %c2_63 = arith.constant 2 : index
    %c0_64 = arith.constant 0 : index
    %c0_65 = arith.constant 0 : index
    %108 = vector.load %arg7[%c2_63, %c0_64, %c0_65] : memref<3x1x16xf32, #tpu.memory_space<vmem>>, vector<1x1x16xf32>
    %109 = vector.shape_cast %108 : vector<1x1x16xf32> to vector<1x16xf32>
    %110 = arith.mulf %94, %107 : vector<1x16xf32>
    %111 = arith.subf %109, %110 : vector<1x16xf32>
    %112 = vector.broadcast %107 : vector<1x16xf32> to vector<64x16xf32>
    %113 = arith.mulf %90, %112 : vector<64x16xf32>
    %114 = vector.broadcast %111 : vector<1x16xf32> to vector<64x16xf32>
    %115 = arith.addf %113, %114 : vector<64x16xf32>
    %c2_66 = arith.constant 2 : index
    %c0_67 = arith.constant 0 : index
    %c0_68 = arith.constant 0 : index
    %116 = vector.load %arg8[%c2_66, %c0_67, %c0_68] : memref<3x16x128xf32, #tpu.memory_space<vmem>>, vector<1x16x128xf32>
    %117 = vector.shape_cast %116 : vector<1x16x128xf32> to vector<16x128xf32>
    %cst_69 = arith.constant dense<0.000000e+00> : vector<64x128xf32>
    %118 = tpu.matmul %115, %117, %cst_69 {dimension_numbers = #tpu.dot_dimension_numbers<[1], [0], [0], [1], [0, 0, 1, 1], [], []>} : vector<64x16xf32>, vector<16x128xf32>, vector<64x128xf32> -> vector<64x128xf32>
    %119 = arith.addf %89, %118 : vector<64x128xf32>
    %c0_70 = arith.constant 0 : index
    %c0_71 = arith.constant 0 : index
    %120 = vector.load %arg9[%c0_70, %c0_71] : memref<1x128xf32, #tpu.memory_space<vmem>>, vector<1x128xf32>
    %121 = vector.broadcast %120 : vector<1x128xf32> to vector<64x128xf32>
    %122 = arith.addf %119, %121 : vector<64x128xf32>
    %c0_72 = arith.constant 0 : index
    %c0_73 = arith.constant 0 : index
    %123 = vector.load %arg10[%c0_72, %c0_73] : memref<64x128xf32, #tpu.memory_space<vmem>>, vector<64x128xf32>
    tpu.vector_store %arg10[%c0_72, %c0_73], %122 {strides = array<i32>} : memref<64x128xf32, #tpu.memory_space<vmem>>, vector<64x128xf32>,
    return
  }
}

</mosaic_0001>

<bundles_post_ra>
// kernel: tpu_custom_call.1
= control target key start
LH: loop header
LB: loop body
LE: loop exit
PB: predicated region body
PF: predicated region fallthrough
CT: control target
= control target key end

     0   :  { %vm46_vm0 = vcmask 130048   ;;  %s3178_s0 = inlined_call_operand.vmem [shape: f32[64,16], index: 0, kind: input, shape index: {}]   ;;  %s3179_s1 = inlined_call_operand.vmem [shape: f32[192,64], index: 1, kind: input, shape index: {}]   ;;  %s3180_s2 = inlined_call_operand.vmem [shape: f32[16,32], index: 2, kind: input, shape index: {}]   ;;  %s3181_s3 = inlined_call_operand.vmem [shape: f32[3,32,16], index: 3, kind: input, shape index: {}]   ;;  %s3182_s4 = inlined_call_operand.vmem [shape: f32[1,32], index: 4, kind: input, shape index: {}]   ;;  %s3183_s5 = inlined_call_operand.vmem [shape: f32[1,16], index: 5, kind: input, shape index: {}]   ;;  %s3184_s6 = inlined_call_operand.vmem [shape: f32[3,1,16], index: 6, kind: input, shape index: {}]   ;;  %s3185_s7 = inlined_call_operand.vmem [shape: f32[3,1,16], index: 7, kind: input, shape index: {}]   ;;  %s3186_s8 = inlined_call_operand.vmem [shape: f32[3,16,128], index: 8, kind: input, shape index: {}]   ;;  %s3187_s9 = inlined_call_operand.vmem [shape: f32[1,128], index: 9, kind: input, shape index: {}]   ;;  %s3188_s10 = inlined_call_operand.hbm [shape: f32[64,128], index: 10, kind: output, shape index: {}]  }
   0x1   :  { %v44_v0 = vld [vmem:[%s3180_s2] sm:$0xff]  ;;  %v45_v1 = vld [vmem:[%s3180_s2 + $0x8] sm:$0xff] }
   0x2   :  { %v36_v2 = vld [vmem:[%s3178_s0] sm:$0xff]  ;;  %v2314_v3 = vpack.c.bf16 %v45_v1, %v44_v0 }
   0x3   :  { %2090 = vmatprep.mubr.msk.f32.mxu0 %vm46_vm0, %v36_v2 }
   0x4   :  { %2315 = vmatprep.subr.bf16.mxu0 %v2314_v3 }
   0x5   :  { %15 = vsyncpa [#allocation3], 0  ;;  %2317 = vmatpush3.bf16.msra.mxu0 %v2314_v3  ;;  %v37_v4 = vld [vmem:[%s3178_s0 + $0x8] sm:$0xff]  ;;  %v38_v5 = vld [vmem:[%s3178_s0 + $0x10] sm:$0xff]  ;;  %vm207_vm1 = vcmask 523264   ;;  %vm498_vm2 = vcmask 261120  }
   0x6   :  { %v39_v6 = vld [vmem:[%s3178_s0 + $0x18] sm:$0xff]  ;;  %v40_v7 = vld [vmem:[%s3178_s0 + $0x20] sm:$0xff]  ;;  %v41_v8 = vld [vmem:[%s3178_s0 + $0x28] sm:$0xff]  ;;  %s2451_s16 = smov [#allocation2]  }
   0x7   :  { %v42_v9 = vld [vmem:[%s3178_s0 + $0x30] sm:$0xff]  ;;  %v43_v10 = vld [vmem:[%s3178_s0 + $0x38] sm:$0xff]  ;;  %v2550_v11 = vld [vmem:[%s3179_s1] sm:$0xff] }
   0x8   :  { %2091 = vmatmul.mubr.msk.f32.vlgmr.msra.gmra.mrb[0].mxu0 %vm46_vm0, %v37_v4  ;;  %2118 = vmatprep.mubr.msk.f32.mxu1 %vm207_vm1, %v2550_v11  ;;  %v2557_v24 = vld [vmem:[%s3179_s1 + $0x8] sm:$0xff]  ;;  %v2562_v25 = vld [vmem:[%s3179_s1 + $0x10] sm:$0xff]  ;;  %v2571_v26 = vld [vmem:[%s3179_s1 + $0x18] sm:$0xff] }
   0x9   :  { %2093 = vmatprep.mubr.msk.f32.mxu0 %vm46_vm0, %v38_v5  ;;  %v2576_v27 = vld [vmem:[%s3179_s1 + $0x20] sm:$0xff]  ;;  %v2585_v28 = vld [vmem:[%s3179_s1 + $0x28] sm:$0xff]  ;;  %v2590_v29 = vld [vmem:[%s3179_s1 + $0x30] sm:$0xff] }
   0xa   :  { %v2599_v30 = vld [vmem:[%s3179_s1 + $0x38] sm:$0xff]  ;;  %v2604_v31 = vld [vmem:[%s3179_s1 + $0x40] sm:$0xff]  ;;  %v2613_v32 = vld [vmem:[%s3179_s1 + $0x48] sm:$0xff] }
   0xb   :  { %v2618_v33 = vld [vmem:[%s3179_s1 + $0x50] sm:$0xff]  ;;  %v2627_v34 = vld [vmem:[%s3179_s1 + $0x58] sm:$0xff]  ;;  %v2632_v35 = vld [vmem:[%s3179_s1 + $0x60] sm:$0xff] }
   0xc   :  { %2094 = vmatmul.mubr.msk.f32.gmra.mrb[2].mxu0 %vm46_vm0, %v39_v6  ;;  %v2641_v36 = vld [vmem:[%s3179_s1 + $0x68] sm:$0xff]  ;;  %v2646_v37 = vld [vmem:[%s3179_s1 + $0x70] sm:$0xff]  ;;  %v2655_v38 = vld [vmem:[%s3179_s1 + $0x78] sm:$0xff] }
   0xd   :  { %2096 = vmatprep.mubr.msk.f32.mxu0 %vm46_vm0, %v40_v7  ;;  %v2660_v39 = vld [vmem:[%s3179_s1 + $0x80] sm:$0xff]  ;;  %v2669_v40 = vld [vmem:[%s3179_s1 + $0x88] sm:$0xff]  ;;  %v2674_v41 = vld [vmem:[%s3179_s1 + $0x90] sm:$0xff] }
   0xe   :  { %v2683_v42 = vld [vmem:[%s3179_s1 + $0x98] sm:$0xff]  ;;  %v2688_v43 = vld [vmem:[%s3179_s1 + $0xa0] sm:$0xff]  ;;  %v2697_v44 = vld [vmem:[%s3179_s1 + $0xa8] sm:$0xff] }
   0xf   :  { %v2702_v45 = vld [vmem:[%s3179_s1 + $0xb0] sm:$0xff]  ;;  %v2711_v46 = vld [vmem:[%s3179_s1 + $0xb8] sm:$0xff]  ;;  %v1856_v47 = vld [vmem:[%s3181_s3 + $0x20] sm:$0xff] }
  0x10   :  { %2097 = vmatmul.mubr.msk.f32.gmra.mrb[4].mxu0 %vm46_vm0, %v41_v8  ;;  %v1857_v48 = vld [vmem:[%s3181_s3 + $0x28] sm:$0xff]  ;;  %v1858_v50 = vld [vmem:[%s3181_s3 + $0x30] sm:$0xff]  ;;  %v1859_v51 = vld [vmem:[%s3181_s3 + $0x38] sm:$0xff] }
  0x11   :  { %2099 = vmatprep.mubr.msk.f32.mxu0 %vm46_vm0, %v42_v9  ;;  %v2334_v49 = vpack.c.bf16 %v1857_v48, %v1856_v47  ;;  %v2338_v52 = vpack.c.bf16 %v1859_v51, %v1858_v50  ;;  %v489_v53 = vld [vmem:[%s3181_s3] sm:$0xff]  ;;  %v490_v54 = vld [vmem:[%s3181_s3 + $0x8] sm:$0xff]  ;;  %v491_v5 = vld [vmem:[%s3181_s3 + $0x10] sm:$0xff] }
  0x12   :  { %v2342_v55 = vpack.c.bf16 %v490_v54, %v489_v53  ;;  %v2744_v0 = vld [vmem:[%s3182_s4] ss:$0 sm:$0xff]  ;;  %v492_v6 = vld [vmem:[%s3181_s3 + $0x18] sm:$0xff] }
  0x13   :  { %2335 = vmatprep.subr.bf16.mxu0 %v2334_v49 }
  0x14   :  { %2100 = vmatmul.mubr.msk.f32.gmra.mrb[6].mxu0 %vm46_vm0, %v43_v10 }
  0x15   :  { %2337 = vmatpush3.bf16.msra.mxu0 %v2334_v49 }
  0x16   :  { %2339 = vmatprep.subr.bf16.mxu0 %v2338_v52 }
  0x19   :  { %2341 = vmatpush3.bf16.msra.mxu0 %v2338_v52 }
  0x1a   :  { %2343 = vmatprep.subr.bf16.mxu0 %v2342_v55 }
  0xdb   :  { %v2092_v12 = vpop.f32.mrb[0].mxu0 }
  0xdc   :  { %v137_v13 = vpop.f32.mrb[1].mxu0 }
  0xdd   :  { %v2318_v14 = vpack.c.bf16 %v2092_v12, %v137_v13  ;;  %v2346_v12 = vpack.c.bf16 %v492_v6, %v491_v5  ;;  %v1879_v5 = vld [vmem:[%s3181_s3 + $0x58] sm:$0xff] }
  0xdf   :  { %v2095_v15 = vpop.f32.mrb[2].mxu0  ;;  %2319 = vmatprep.subr.bf16.mxu1 %v2318_v14 }
  0xe0   :  { %v147_v16 = vpop.f32.mrb[3].mxu0  ;;  %2321 = vmatpush3.bf16.msra.mxu1 %v2318_v14  ;;  %v1876_v14 = vld [vmem:[%s3181_s3 + $0x40] sm:$0xff] }
  0xe1   :  { %v2322_v17 = vpack.c.bf16 %v2095_v15, %v147_v16  ;;  %v1877_v15 = vld [vmem:[%s3181_s3 + $0x48] sm:$0xff] }
  0xe3   :  { %v2098_v18 = vpop.f32.mrb[4].mxu0  ;;  %2323 = vmatprep.subr.bf16.mxu1 %v2322_v17 }
  0xe4   :  { %v157_v19 = vpop.f32.mrb[5].mxu0  ;;  %2325 = vmatpush3.bf16.msra.mxu1 %v2322_v17 }
  0xe5   :  { %v2326_v20 = vpack.c.bf16 %v2098_v18, %v157_v19 }
  0xe7   :  { %v2101_v21 = vpop.f32.mrb[6].mxu0  ;;  %2327 = vmatprep.subr.bf16.mxu1 %v2326_v20 }
  0xe8   :  { %v167_v22 = vpop.f32.mrb[7].mxu0  ;;  %2329 = vmatpush3.bf16.msra.mxu1 %v2326_v20 }
  0xe9   :  { %v2330_v23 = vpack.c.bf16 %v2101_v21, %v167_v22  ;;  %v2350_v21 = vpack.c.bf16 %v1877_v15, %v1876_v14 }
  0xeb   :  { %2331 = vmatprep.subr.bf16.mxu1 %v2330_v23 }
  0xec   :  { %2333 = vmatpush3.bf16.msra.mxu1 %v2330_v23 }
  0xef   :  { %2119 = vmatmul.mubr.msk.f32.vlgmr.msra.gmra.mrb[0].mxu1 %vm207_vm1, %v2557_v24 }
  0xf0   :  { %2121 = vmatprep.mubr.msk.f32.mxu1 %vm207_vm1, %v2562_v25 }
  0xf3   :  { %2122 = vmatmul.mubr.msk.f32.gmra.mrb[2].mxu1 %vm207_vm1, %v2571_v26 }
  0xf4   :  { %2124 = vmatprep.mubr.msk.f32.mxu1 %vm207_vm1, %v2576_v27 }
  0xf7   :  { %2125 = vmatmul.mubr.msk.f32.gmra.mrb[4].mxu1 %vm207_vm1, %v2585_v28 }
  0xf8   :  { %2127 = vmatprep.mubr.msk.f32.mxu1 %vm207_vm1, %v2590_v29 }
  0xfb   :  { %2128 = vmatmul.mubr.msk.f32.gmra.mrb[6].mxu1 %vm207_vm1, %v2599_v30 }
  0xfc   :  { %2130 = vmatprep.mubr.msk.f32.mxu1 %vm207_vm1, %v2604_v31 }
  0xff   :  { %2131 = vmatmul.mubr.msk.f32.gmra.mrb[8].mxu1 %vm207_vm1, %v2613_v32 }
 0x100   :  { %2133 = vmatprep.mubr.msk.f32.mxu1 %vm207_vm1, %v2618_v33 }
 0x103   :  { %2134 = vmatmul.mubr.msk.f32.gmra.mrb[10].mxu1 %vm207_vm1, %v2627_v34 }
 0x104   :  { %2136 = vmatprep.mubr.msk.f32.mxu1 %vm207_vm1, %v2632_v35 }
 0x107   :  { %2137 = vmatmul.mubr.msk.f32.gmra.mrb[12].mxu1 %vm207_vm1, %v2641_v36 }
 0x108   :  { %2139 = vmatprep.mubr.msk.f32.mxu1 %vm207_vm1, %v2646_v37 }
 0x10b   :  { %2140 = vmatmul.mubr.msk.f32.gmra.mrb[14].mxu1 %vm207_vm1, %v2655_v38 }
 0x10c   :  { %2142 = vmatprep.mubr.msk.f32.mxu1 %vm207_vm1, %v2660_v39 }
 0x10f   :  { %2143 = vmatmul.mubr.msk.f32.gmra.mrb[16].mxu1 %vm207_vm1, %v2669_v40 }
 0x110   :  { %2145 = vmatprep.mubr.msk.f32.mxu1 %vm207_vm1, %v2674_v41 }
 0x113   :  { %2146 = vmatmul.mubr.msk.f32.gmra.mrb[18].mxu1 %vm207_vm1, %v2683_v42 }
 0x114   :  { %2148 = vmatprep.mubr.msk.f32.mxu1 %vm207_vm1, %v2688_v43 }
 0x117   :  { %2149 = vmatmul.mubr.msk.f32.gmra.mrb[20].mxu1 %vm207_vm1, %v2697_v44 }
 0x118   :  { %2151 = vmatprep.mubr.msk.f32.mxu1 %vm207_vm1, %v2702_v45 }
 0x11b   :  { %2152 = vmatmul.mubr.msk.f32.gmra.mrb[22].mxu1 %vm207_vm1, %v2711_v46 }
 0x11c   :  { %2230 = vmatprep.mubr.msk.f32.mxu1 %vm207_vm1, %v2550_v11 }
 0x1c2   :  { %v2120_v56 = vpop.f32.mrb[0].mxu1 }
 0x1c3   :  { %v346_v57 = vpop.f32.mrb[1].mxu1 }
 0x1c4   :  { %v347_v51 = vadd.f32 %v2744_v0, %v346_v57  ;;  %v1878_v57 = vld [vmem:[%s3181_s3 + $0x50] sm:$0xff]  ;;  %s1812_s3 = sshll.u32 %s2451_s16, 4  ;;  %s1813_s3 = int_to_ptr.vmem [resolvable:$true] %s1812_s3 }
 0x1c5   :  { %p2432_p1 = scmp.lt.s32.totalorder %s1813_s3, %s1813_s3 }
 0x1c6   :  { %v2123_v58 = vpop.f32.mrb[2].mxu1 }
 0x1c7   :  { %v356_v59 = vpop.f32.mrb[3].mxu1 }
 0x1ca   :  { %v2735_v60 = vpop.f32.mrb[4].mxu1 }
 0x1cb   :  { %v366_v61 = vpop.f32.mrb[5].mxu1 }
 0x1ce   :  { %v2737_v62 = vpop.f32.mrb[6].mxu1 }
 0x1cf   :  { %v2739_v63 = vpop.f32.mrb[7].mxu1 }
 0x1d2   :  { %v2132_v1 = vpop.f32.mrb[8].mxu1 }
 0x1d3   :  { %v392_v2 = vadd.f32 %v2132_v1, %v2744_v0  ;;  %v386_v3 = vpop.f32.mrb[9].mxu1 }
 0x1d4   :  { %v387_v4 = vadd.f32 %v2744_v0, %v386_v3  ;;  %v465_v3 = vmax.f32 %v347_v51, 0.0 }
 0x1d5   :  { %v474_v9 = vmax.f32 %v392_v2, 0.0 }
 0x1d6   :  { %v473_v7 = vmax.f32 %v387_v4, 0.0  ;;  %v2135_v8 = vpop.f32.mrb[10].mxu1  ;;  %v357_v4 = vadd.f32 %v2744_v0, %v356_v59 }
 0x1d7   :  { %v402_v10 = vadd.f32 %v2135_v8, %v2744_v0  ;;  %v396_v11 = vpop.f32.mrb[11].mxu1  ;;  %v2354_v8 = vpack.c.bf16 %v1879_v5, %v1878_v57 }
 0x1d8   :  { %v397_v13 = vadd.f32 %v2744_v0, %v396_v11  ;;  %2162 = vmatprep.mubr.msk.f32.mxu0 %vm498_vm2, %v473_v7  ;;  %v362_v7 = vadd.f32 %v2123_v58, %v2744_v0  ;;  %v377_v58 = vadd.f32 %v2744_v0, %v2739_v63 }
 0x1d9   :  { %2163 = vmatmul.mubr.msk.f32.vlgmr.msra.gmra.mrb[8].mxu0 %vm498_vm2, %v474_v9  ;;  %v476_v18 = vmax.f32 %v402_v10, 0.0  ;;  %v467_v9 = vmax.f32 %v357_v4, 0.0  ;;  %v367_v10 = vadd.f32 %v2744_v0, %v366_v61 }
 0x1da   :  { %v475_v16 = vmax.f32 %v397_v13, 0.0  ;;  %v2138_v17 = vpop.f32.mrb[12].mxu1  ;;  %2345 = vmatpush3.bf16.msra.mxu0 %v2342_v55  ;;  %v352_v55 = vadd.f32 %v2120_v56, %v2744_v0  ;;  %v372_v13 = vadd.f32 %v2735_v60, %v2744_v0  ;;  %v471_v60 = vmax.f32 %v377_v58, 0.0 }
 0x1db   :  { %v412_v19 = vadd.f32 %v2138_v17, %v2744_v0  ;;  %v406_v20 = vpop.f32.mrb[13].mxu1  ;;  %2347 = vmatprep.subr.bf16.mxu0 %v2346_v12  ;;  %v469_v15 = vmax.f32 %v367_v10, 0.0 }
 0x1dc   :  { %v407_v22 = vadd.f32 %v2744_v0, %v406_v20  ;;  %2165 = vmatprep.mubr.msk.f32.mxu0 %vm498_vm2, %v475_v16  ;;  %v466_v6 = vmax.f32 %v352_v55, 0.0  ;;  %v470_v17 = vmax.f32 %v372_v13, 0.0 }
 0x1dd   :  { %2166 = vmatmul.mubr.msk.f32.gmra.mrb[10].mxu0 %vm498_vm2, %v476_v18  ;;  %v478_v48 = vmax.f32 %v412_v19, 0.0  ;;  %v382_v18 = vadd.f32 %v2737_v62, %v2744_v0 }
 0x1de   :  { %v477_v23 = vmax.f32 %v407_v22, 0.0  ;;  %v2141_v47 = vpop.f32.mrb[14].mxu1  ;;  %2349 = vmatpush3.bf16.msra.mxu0 %v2346_v12  ;;  %v468_v12 = vmax.f32 %v362_v7, 0.0 }
 0x1df   :  { %v422_v49 = vadd.f32 %v2141_v47, %v2744_v0  ;;  %v416_v50 = vpop.f32.mrb[15].mxu1  ;;  %2351 = vmatprep.subr.bf16.mxu0 %v2350_v21 }
 0x1e0   :  { %v417_v52 = vadd.f32 %v2744_v0, %v416_v50  ;;  %2168 = vmatprep.mubr.msk.f32.mxu0 %vm498_vm2, %v477_v23 }
 0x1e1   :  { %2169 = vmatmul.mubr.msk.f32.gmra.mrb[12].mxu0 %vm498_vm2, %v478_v48  ;;  %v480_v1 = vmax.f32 %v422_v49, 0.0 }
 0x1e2   :  { %v479_v53 = vmax.f32 %v417_v52, 0.0  ;;  %v2144_v54 = vpop.f32.mrb[16].mxu1 }
 0x1e3   :  { %v426_v2 = vpop.f32.mrb[17].mxu1  ;;  %v432_v22 = vadd.f32 %v2144_v54, %v2744_v0 }
 0x1e4   :  { %2171 = vmatprep.mubr.msk.f32.mxu0 %vm498_vm2, %v479_v53  ;;  %v427_v61 = vadd.f32 %v2744_v0, %v426_v2 }
 0x1e5   :  { %2172 = vmatmul.mubr.msk.f32.gmra.mrb[14].mxu0 %vm498_vm2, %v480_v1  ;;  %v482_v62 = vmax.f32 %v432_v22, 0.0 }
 0x1e6   :  { %2182 = vmatprep.mubr.msk.f32.mxu0 %vm498_vm2, %v465_v3  ;;  %v2147_v56 = vpop.f32.mrb[18].mxu1  ;;  %v481_v20 = vmax.f32 %v427_v61, 0.0 }
 0x1e7   :  { %v436_v59 = vpop.f32.mrb[19].mxu1  ;;  %v442_v48 = vadd.f32 %v2147_v56, %v2744_v0 }
 0x1e8   :  { %v437_v63 = vadd.f32 %v2744_v0, %v436_v59 }
 0x1e9   :  { %2183 = vmatmul.mubr.msk.f32.vlgmr.msra.gmra.mrb[8].mxu0 %vm498_vm2, %v466_v6  ;;  %v484_v51 = vmax.f32 %v442_v48, 0.0 }
 0x1ea   :  { %2185 = vmatprep.mubr.msk.f32.mxu0 %vm498_vm2, %v467_v9  ;;  %2353 = vmatpush3.bf16.msra.mxu0 %v2350_v21  ;;  %v2150_v11 = vpop.f32.mrb[20].mxu1  ;;  %v472_v21 = vmax.f32 %v382_v18, 0.0  ;;  %v483_v23 = vmax.f32 %v437_v63, 0.0 }
 0x1eb   :  { %2355 = vmatprep.subr.bf16.mxu0 %v2354_v8  ;;  %v446_v14 = vpop.f32.mrb[21].mxu1  ;;  %v452_v52 = vadd.f32 %v2150_v11, %v2744_v0 }
 0x1ec   :  { %v447_v47 = vadd.f32 %v2744_v0, %v446_v14 }
 0x1ed   :  { %2186 = vmatmul.mubr.msk.f32.gmra.mrb[10].mxu0 %vm498_vm2, %v468_v12  ;;  %v486_v54 = vmax.f32 %v452_v52, 0.0 }
 0x1ee   :  { %2188 = vmatprep.mubr.msk.f32.mxu0 %vm498_vm2, %v469_v15  ;;  %2357 = vmatpush3.bf16.msra.mxu0 %v2354_v8  ;;  %v2153_v16 = vpop.f32.mrb[22].mxu1  ;;  %v485_v49 = vmax.f32 %v447_v47, 0.0 }
 0x1ef   :  { %v456_v19 = vpop.f32.mrb[23].mxu1  ;;  %v462_v55 = vadd.f32 %v2153_v16, %v2744_v0 }
 0x1f0   :  { %v457_v50 = vadd.f32 %v2744_v0, %v456_v19 }
 0x1f1   :  { %2189 = vmatmul.mubr.msk.f32.gmra.mrb[12].mxu0 %vm498_vm2, %v470_v17  ;;  %v488_v1 = vmax.f32 %v462_v55, 0.0 }
 0x1f2   :  { %2191 = vmatprep.mubr.msk.f32.mxu0 %vm498_vm2, %v471_v60  ;;  %v487_v53 = vmax.f32 %v457_v50, 0.0 }
 0x1f5   :  { %2192 = vmatmul.mubr.msk.f32.gmra.mrb[14].mxu0 %vm498_vm2, %v472_v21 }
 0x1f6   :  { %2202 = vmatprep.mubr.msk.f32.mxu0 %vm498_vm2, %v481_v20 }
 0x1f9   :  { %2203 = vmatmul.mubr.msk.f32.vlgmr.msra.gmra.mrb[8].mxu0 %vm498_vm2, %v482_v62 }
 0x1fa   :  { %2205 = vmatprep.mubr.msk.f32.mxu0 %vm498_vm2, %v483_v23 }
 0x1fd   :  { %2206 = vmatmul.mubr.msk.f32.gmra.mrb[10].mxu0 %vm498_vm2, %v484_v51 }
 0x1fe   :  { %2208 = vmatprep.mubr.msk.f32.mxu0 %vm498_vm2, %v485_v49 }
 0x201   :  { %2209 = vmatmul.mubr.msk.f32.gmra.mrb[12].mxu0 %vm498_vm2, %v486_v54 }
 0x202   :  { %2211 = vmatprep.mubr.msk.f32.mxu0 %vm498_vm2, %v487_v53 }
 0x205   :  { %2212 = vmatmul.mubr.msk.f32.gmra.mrb[14].mxu0 %vm498_vm2, %v488_v1 }
 0x2cc   :  { %v2204_v2 = vpop.f32.mrb[8].mxu0 }
 0x2cd   :  { %v852_v3 = vpop.f32.mrb[9].mxu0 }
 0x2ce   :  { %v2358_v4 = vpack.c.bf16 %v2204_v2, %v852_v3 }
 0x2d0   :  { %v2207_v57 = vpop.f32.mrb[10].mxu0  ;;  %2359 = vmatprep.subr.bf16.mxu1 %v2358_v4 }
 0x2d1   :  { %v862_v5 = vpop.f32.mrb[11].mxu0  ;;  %2361 = vmatpush3.bf16.msra.mxu1 %v2358_v4 }
 0x2d2   :  { %v2362_v56 = vpack.c.bf16 %v2207_v57, %v862_v5 }
 0x2d4   :  { %v2210_v6 = vpop.f32.mrb[12].mxu0  ;;  %2363 = vmatprep.subr.bf16.mxu1 %v2362_v56 }
 0x2d5   :  { %v872_v7 = vpop.f32.mrb[13].mxu0  ;;  %2365 = vmatpush3.bf16.msra.mxu1 %v2362_v56 }
 0x2d6   :  { %v2366_v0 = vpack.c.bf16 %v2210_v6, %v872_v7 }
 0x2d8   :  { %v2213_v8 = vpop.f32.mrb[14].mxu0  ;;  %2367 = vmatprep.subr.bf16.mxu1 %v2366_v0 }
 0x2d9   :  { %v882_v59 = vpop.f32.mrb[15].mxu0  ;;  %2369 = vmatpush3.bf16.msra.mxu1 %v2366_v0 }
 0x2da   :  { %v2370_v9 = vpack.c.bf16 %v2213_v8, %v882_v59 }
 0x2dc   :  { %2371 = vmatprep.subr.bf16.mxu1 %v2370_v9 }
 0x2dd   :  { %2373 = vmatpush3.bf16.msra.mxu1 %v2370_v9 }
 0x2e0   :  { %2231 = vmatmul.mubr.msk.f32.vlgmr.msra.gmra.mrb[24].mxu1 %vm207_vm1, %v2557_v24  ;;  %v1915_v24 = vld [vmem:[%s3186_s8 + $0x10] sm:$0xff] }
 0x2e1   :  { %2233 = vmatprep.mubr.msk.f32.mxu1 %vm207_vm1, %v2562_v25  ;;  %v1916_v25 = vld [vmem:[%s3186_s8 + $0x18] sm:$0xff] }
 0x2e4   :  { %2234 = vmatmul.mubr.msk.f32.gmra.mrb[26].mxu1 %vm207_vm1, %v2571_v26  ;;  %v2374_v26 = vpack.c.bf16 %v1916_v25, %v1915_v24 }
 0x2e5   :  { %2236 = vmatprep.mubr.msk.f32.mxu1 %vm207_vm1, %v2576_v27  ;;  %v2870_v27 = vld [vmem:[%s3183_s5] ss:$0 sm:$0xff] }
 0x2e6   :  { %2375 = vmatprep.subr.bf16.mxu0 %v2374_v26 }
 0x2e7   :  { %2377 = vmatpush3.bf16.msra.mxu0 %v2374_v26 }
 0x2e8   :  { %2237 = vmatmul.mubr.msk.f32.gmra.mrb[28].mxu1 %vm207_vm1, %v2585_v28 }
 0x2e9   :  { %2239 = vmatprep.mubr.msk.f32.mxu1 %vm207_vm1, %v2590_v29 }
 0x2ec   :  { %2240 = vmatmul.mubr.msk.f32.gmra.mrb[30].mxu1 %vm207_vm1, %v2599_v30 }
 0x2ed   :  { %2242 = vmatprep.mubr.msk.f32.mxu1 %vm207_vm1, %v2604_v31 }
 0x2f0   :  { %2243 = vmatmul.mubr.msk.f32.gmra.mrb[32].mxu1 %vm207_vm1, %v2613_v32 }
 0x2f1   :  { %2245 = vmatprep.mubr.msk.f32.mxu1 %vm207_vm1, %v2618_v33 }
 0x2f4   :  { %2246 = vmatmul.mubr.msk.f32.gmra.mrb[34].mxu1 %vm207_vm1, %v2627_v34 }
 0x2f5   :  { %2248 = vmatprep.mubr.msk.f32.mxu1 %vm207_vm1, %v2632_v35  ;;  %v1187_v35 = vld [vmem:[%s3186_s8] sm:$0xff] }
 0x2f8   :  { %2249 = vmatmul.mubr.msk.f32.gmra.mrb[36].mxu1 %vm207_vm1, %v2641_v36  ;;  %v1188_v36 = vld [vmem:[%s3186_s8 + $0x8] sm:$0xff] }
 0x2f9   :  { %2251 = vmatprep.mubr.msk.f32.mxu1 %vm207_vm1, %v2646_v37 }
 0x2fc   :  { %2252 = vmatmul.mubr.msk.f32.gmra.mrb[38].mxu1 %vm207_vm1, %v2655_v38  ;;  %v2888_v38 = vpack.c.bf16 %v1188_v36, %v1187_v35 }
 0x2fd   :  { %2254 = vmatprep.mubr.msk.f32.mxu1 %vm207_vm1, %v2660_v39 }
 0x2fe   :  { %2379 = vmatprep.subr.bf16.mxu0 %v2888_v38 }
 0x300   :  { %2255 = vmatmul.mubr.msk.f32.gmra.mrb[40].mxu1 %vm207_vm1, %v2669_v40 }
 0x301   :  { %2257 = vmatprep.mubr.msk.f32.mxu1 %vm207_vm1, %v2674_v41 }
 0x304   :  { %2258 = vmatmul.mubr.msk.f32.gmra.mrb[42].mxu1 %vm207_vm1, %v2683_v42 }
 0x305   :  { %2260 = vmatprep.mubr.msk.f32.mxu1 %vm207_vm1, %v2688_v43 }
 0x308   :  { %2261 = vmatmul.mubr.msk.f32.gmra.mrb[44].mxu1 %vm207_vm1, %v2697_v44 }
 0x309   :  { %2263 = vmatprep.mubr.msk.f32.mxu1 %vm207_vm1, %v2702_v45 }
 0x30c   :  { %2264 = vmatmul.mubr.msk.f32.gmra.mrb[46].mxu1 %vm207_vm1, %v2711_v46 }
 0x3b3   :  { %v2232_v28 = vpop.f32.mrb[24].mxu1 }
 0x3b4   :  { %v2873_v29 = vadd.f32 %v2232_v28, %v2870_v27  ;;  %v972_v30 = vpop.f32.mrb[25].mxu1 }
 0x3b5   :  { %v2876_v31 = vadd.f32 %v2870_v27, %v972_v30 }
 0x3b6   :  { %v1092_v32 = vsel %vm46_vm0, %v2873_v29, 0.0 }
 0x3b7   :  { %v1091_v33 = vsel %vm46_vm0, %v2876_v31, 0.0  ;;  %v2235_v34 = vpop.f32.mrb[26].mxu1 }
 0x3b8   :  { %v982_v37 = vpop.f32.mrb[27].mxu1  ;;  %v2891_v39 = vadd.f32 %v2235_v34, %v2870_v27  ;;  %v1093_v41 = vadd.f32 %v1092_v32, %v1091_v33 }
 0x3b9   :  { %v2894_v40 = vadd.f32 %v2870_v27, %v982_v37 }
 0x3ba   :  { %v1096_v46 = vsel %vm46_vm0, %v2891_v39, 0.0 }
 0x3bb   :  { %v1094_v42 = vsel %vm46_vm0, %v2894_v40, 0.0  ;;  %v2238_v43 = vpop.f32.mrb[28].mxu1 }
 0x3bc   :  { %v1095_v44 = vadd.f32 %v1094_v42, %v1093_v41  ;;  %v992_v45 = vpop.f32.mrb[29].mxu1  ;;  %v2902_v10 = vadd.f32 %v2238_v43, %v2870_v27 }
 0x3bd   :  { %v2905_v11 = vadd.f32 %v2870_v27, %v992_v45 }
 0x3be   :  { %v1097_v12 = vadd.f32 %v1096_v46, %v1095_v44  ;;  %v1100_v61 = vsel %vm46_vm0, %v2902_v10, 0.0 }
 0x3bf   :  { %v1098_v13 = vsel %vm46_vm0, %v2905_v11, 0.0  ;;  %v2241_v14 = vpop.f32.mrb[30].mxu1 }
 0x3c0   :  { %v1099_v15 = vadd.f32 %v1098_v13, %v1097_v12  ;;  %v1002_v58 = vpop.f32.mrb[31].mxu1  ;;  %v2912_v16 = vadd.f32 %v2241_v14, %v2870_v27 }
 0x3c1   :  { %v2915_v17 = vadd.f32 %v2870_v27, %v1002_v58 }
 0x3c2   :  { %v1101_v18 = vadd.f32 %v1100_v61, %v1099_v15  ;;  %v1104_v22 = vsel %vm46_vm0, %v2912_v16, 0.0 }
 0x3c3   :  { %v1102_v19 = vsel %vm46_vm0, %v2915_v17, 0.0  ;;  %v2244_v60 = vpop.f32.mrb[32].mxu1 }
 0x3c4   :  { %v1103_v20 = vadd.f32 %v1102_v19, %v1101_v18  ;;  %v2920_v63 = vadd.f32 %v2244_v60, %v2870_v27  ;;  %v1012_v21 = vpop.f32.mrb[33].mxu1 }
 0x3c5   :  { %v2925_v23 = vadd.f32 %v2870_v27, %v1012_v21 }
 0x3c6   :  { %v1105_v47 = vadd.f32 %v1104_v22, %v1103_v20  ;;  %v1190_v62 = vsel %vm46_vm0, %v2920_v63, 0.0 }
 0x3c7   :  { %v1189_v48 = vsel %vm46_vm0, %v2925_v23, 0.0  ;;  %v2247_v49 = vpop.f32.mrb[34].mxu1 }
 0x3c8   :  { %v1106_v50 = vrot.slane %v1105_v47, 4  ;;  %v1022_v51 = vpop.f32.mrb[35].mxu1  ;;  %v2932_v52 = vadd.f32 %v2247_v49, %v2870_v27  ;;  %v1191_v55 = vadd.f32 %v1190_v62, %v1189_v48 }
 0x3c9   :  { %v2935_v53 = vadd.f32 %v2870_v27, %v1022_v51 }
 0x3ca   :  { %v1107_v54 = vadd.f32 %v1106_v50, %v1105_v47  ;;  %v1194_v5 = vsel %vm46_vm0, %v2932_v52, 0.0 }
 0x3cb   :  { %v1192_v1 = vsel %vm46_vm0, %v2935_v53, 0.0  ;;  %v2250_v2 = vpop.f32.mrb[36].mxu1 }
 0x3cc   :  { %v1108_v3 = vrot.slane %v1107_v54, 2  ;;  %v1193_v4 = vadd.f32 %v1192_v1, %v1191_v55  ;;  %v1032_v57 = vpop.f32.mrb[37].mxu1  ;;  %v2945_v7 = vadd.f32 %v2250_v2, %v2870_v27 }
 0x3cd   :  { %v2942_v56 = vadd.f32 %v2870_v27, %v1032_v57 }
 0x3ce   :  { %v1109_v6 = vadd.f32 %v1108_v3, %v1107_v54  ;;  %v1195_v0 = vadd.f32 %v1194_v5, %v1193_v4  ;;  %v1198_v30 = vsel %vm46_vm0, %v2945_v7, 0.0 }
 0x3cf   :  { %v1196_v8 = vsel %vm46_vm0, %v2942_v56, 0.0  ;;  %v2253_v59 = vpop.f32.mrb[38].mxu1 }
 0x3d0   :  { %v1110_v9 = vrot.slane %v1109_v6, 1  ;;  %v1197_v24 = vadd.f32 %v1196_v8, %v1195_v0  ;;  %v1042_v25 = vpop.f32.mrb[39].mxu1  ;;  %v2967_v44 = vadd.f32 %v2253_v59, %v2870_v27 }
 0x3d1   :  { %v2950_v26 = vadd.f32 %v2870_v27, %v1042_v25 }
 0x3d2   :  { %v1111_v28 = vadd.f32 %v1110_v9, %v1109_v6  ;;  %v1199_v32 = vadd.f32 %v1198_v30, %v1197_v24  ;;  %v1202_v47 = vsel %vm46_vm0, %v2967_v44, 0.0 }
 0x3d3   :  { %v2256_v33 = vpop.f32.mrb[40].mxu1  ;;  %v1200_v35 = vsel %vm46_vm0, %v2950_v26, 0.0 }
 0x3d4   :  { %v2954_v34 = vmul.f32 0.015625, %v1111_v28  ;;  %v1052_v36 = vpop.f32.mrb[41].mxu1  ;;  %v1201_v45 = vadd.f32 %v1200_v35, %v1199_v32  ;;  %v2970_v46 = vadd.f32 %v2256_v33, %v2870_v27 }
 0x3d5   :  { %v2973_v58 = vadd.f32 %v2870_v27, %v1052_v36 }
 0x3d6   :  { %v1114_v37 = vsub.f32 %v2876_v31, %v2954_v34  ;;  %v1115_v41 = vsub.f32 %v2873_v29, %v2954_v34  ;;  %v1116_v42 = vsub.f32 %v2894_v40, %v2954_v34  ;;  %v1117_v43 = vsub.f32 %v2891_v39, %v2954_v34 }
 0x3d7   :  { %v2259_v12 = vpop.f32.mrb[42].mxu1  ;;  %v1118_v18 = vsub.f32 %v2905_v11, %v2954_v34  ;;  %v1119_v21 = vsub.f32 %v2902_v10, %v2954_v34  ;;  %v1203_v49 = vadd.f32 %v1202_v47, %v1201_v45  ;;  %v1548_v50 = vsel %vm46_vm0, %v2970_v46, 0.0 }
 0x3d8   :  { %v1122_v13 = vmul.f32 %v1114_v37, %v1114_v37  ;;  %v1123_v14 = vmul.f32 %v1115_v41, %v1115_v41  ;;  %v1124_v15 = vmul.f32 %v1116_v42, %v1116_v42  ;;  %v1062_v61 = vpop.f32.mrb[43].mxu1  ;;  %v1125_v19 = vmul.f32 %v1117_v43, %v1117_v43 }
 0x3d9   :  { %v1547_v51 = vsel %vm46_vm0, %v2973_v58, 0.0  ;;  %v2989_v2 = vadd.f32 %v2259_v12, %v2870_v27  ;;  %v2992_v3 = vadd.f32 %v2870_v27, %v1062_v61  ;;  %v1126_v4 = vmul.f32 %v1118_v18, %v1118_v18 }
 0x3da   :  { %v1130_v60 = vsel %vm46_vm0, %v1122_v13, 0.0  ;;  %v1131_v20 = vsel %vm46_vm0, %v1123_v14, 0.0  ;;  %v1133_v48 = vsel %vm46_vm0, %v1124_v15, 0.0  ;;  %v1549_v1 = vadd.f32 %v1548_v50, %v1547_v51 }
 0x3db   :  { %v1132_v22 = vadd.f32 %v1131_v20, %v1130_v60  ;;  %v2262_v62 = vpop.f32.mrb[44].mxu1  ;;  %v1135_v57 = vsel %vm46_vm0, %v1125_v19, 0.0  ;;  %v1204_v5 = vrot.slane %v1203_v49, 4  ;;  %v1552_v8 = vsel %vm46_vm0, %v2989_v2, 0.0 }
 0x3dc   :  { %v1072_v54 = vpop.f32.mrb[45].mxu1  ;;  %v1550_v59 = vsel %vm46_vm0, %v2992_v3, 0.0  ;;  %v3003_v28 = vadd.f32 %v2262_v62, %v2870_v27  ;;  %v1120_v32 = vsub.f32 %v2915_v17, %v2954_v34  ;;  %v1127_v35 = vmul.f32 %v1119_v21, %v1119_v21 }
 0x3dd   :  { %v1134_v55 = vadd.f32 %v1133_v48, %v1132_v22  ;;  %v2996_v6 = vadd.f32 %v2870_v27, %v1072_v54  ;;  %v1205_v24 = vadd.f32 %v1204_v5, %v1203_v49  ;;  %v1551_v25 = vadd.f32 %v1550_v59, %v1549_v1 }
 0x3de   :  { %v1137_v36 = vsel %vm46_vm0, %v1126_v4, 0.0  ;;  %v1556_v45 = vsel %vm46_vm0, %v3003_v28, 0.0  ;;  %v1121_v14 = vsub.f32 %v2912_v16, %v2954_v34  ;;  %v1128_v15 = vmul.f32 %v1120_v32, %v1120_v32 }
 0x3df   :  { %v1136_v0 = vadd.f32 %v1135_v57, %v1134_v55  ;;  %v2265_v9 = vpop.f32.mrb[46].mxu1  ;;  %v1554_v33 = vsel %vm46_vm0, %v2996_v6, 0.0  ;;  %v1206_v37 = vrot.slane %v1205_v24, 2  ;;  %v1553_v41 = vadd.f32 %v1552_v8, %v1551_v25 }
 0x3e0   :  { %v1082_v30 = vpop.f32.mrb[47].mxu1  ;;  %v1139_v61 = vsel %vm46_vm0, %v1127_v35, 0.0  ;;  %v3019_v60 = vadd.f32 %v2265_v9, %v2870_v27  ;;  %v1129_v47 = vmul.f32 %v1121_v14, %v1121_v14  ;;  %v1141_v62 = vsel %vm46_vm0, %v1128_v15, 0.0 }
 0x3e1   :  { %v1138_v42 = vadd.f32 %v1137_v36, %v1136_v0  ;;  %v1207_v43 = vadd.f32 %v1206_v37, %v1205_v24  ;;  %v1555_v12 = vadd.f32 %v1554_v33, %v1553_v41  ;;  %v3013_v13 = vadd.f32 %v2870_v27, %v1082_v30 }
 0x3e2   :  { %v1560_v50 = vsel %vm46_vm0, %v3019_v60, 0.0  ;;  %v1143_v4 = vsel %vm46_vm0, %v1129_v47, 0.0 }
 0x3e3   :  { %v1208_v18 = vrot.slane %v1207_v43, 1  ;;  %v1140_v19 = vadd.f32 %v1139_v61, %v1138_v42  ;;  %v1557_v20 = vadd.f32 %v1556_v45, %v1555_v12  ;;  %v1558_v22 = vsel %vm46_vm0, %v3013_v13, 0.0 }
 0x3e5   :  { %v1209_v21 = vadd.f32 %v1208_v18, %v1207_v43  ;;  %v1142_v49 = vadd.f32 %v1141_v62, %v1140_v19  ;;  %v1559_v51 = vadd.f32 %v1558_v22, %v1557_v20 }
 0x3e7   :  { %v3024_v48 = vmul.f32 0.015625, %v1209_v21  ;;  %v1144_v59 = vadd.f32 %v1143_v4, %v1142_v49  ;;  %v1561_v9 = vadd.f32 %v1560_v50, %v1559_v51 }
 0x3e9   :  { %v1211_v54 = vsub.f32 %v2925_v23, %v3024_v48  ;;  %v1212_v27 = vsub.f32 %v2920_v63, %v3024_v48  ;;  %v1213_v55 = vsub.f32 %v2935_v53, %v3024_v48  ;;  %v1214_v1 = vsub.f32 %v2932_v52, %v3024_v48 }
 0x3ea   :  { %v1215_v57 = vsub.f32 %v2942_v56, %v3024_v48  ;;  %v1216_v24 = vsub.f32 %v2945_v7, %v3024_v48  ;;  %v1217_v35 = vsub.f32 %v2950_v26, %v3024_v48  ;;  %v1145_v41 = vrot.slane %v1144_v59, 4 }
 0x3eb   :  { %v1219_v5 = vmul.f32 %v1211_v54, %v1211_v54  ;;  %v1220_v0 = vmul.f32 %v1212_v27, %v1212_v27  ;;  %v1221_v8 = vmul.f32 %v1213_v55, %v1213_v55  ;;  %v1222_v25 = vmul.f32 %v1214_v1, %v1214_v1 }
 0x3ec   :  { %v1223_v36 = vmul.f32 %v1215_v57, %v1215_v57  ;;  %v1562_v43 = vrot.slane %v1561_v9, 4  ;;  %v1218_v45 = vsub.f32 %v2967_v44, %v3024_v48  ;;  %v1224_v12 = vmul.f32 %v1216_v24, %v1216_v24 }
 0x3ed   :  { %v1227_v30 = vsel %vm46_vm0, %v1219_v5, 0.0  ;;  %v1228_v32 = vsel %vm46_vm0, %v1220_v0, 0.0  ;;  %v1230_v37 = vsel %vm46_vm0, %v1221_v8, 0.0  ;;  %v1232_v14 = vsel %vm46_vm0, %v1222_v25, 0.0 }
 0x3ee   :  { %v1229_v33 = vadd.f32 %v1228_v32, %v1227_v30  ;;  %v1563_v61 = vadd.f32 %v1562_v43, %v1561_v9  ;;  %v1225_v18 = vmul.f32 %v1217_v35, %v1217_v35  ;;  %v1234_v19 = vsel %vm46_vm0, %v1223_v36, 0.0 }
 0x3ef   :  { %v1146_v20 = vadd.f32 %v1145_v41, %v1144_v59  ;;  %v1226_v47 = vmul.f32 %v1218_v45, %v1218_v45  ;;  %v1236_v62 = vsel %vm46_vm0, %v1224_v12, 0.0 }
 0x3f0   :  { %v1231_v42 = vadd.f32 %v1230_v37, %v1229_v33  ;;  %v1564_v22 = vrot.slane %v1563_v61, 2  ;;  %v1238_v51 = vsel %vm46_vm0, %v1225_v18, 0.0 }
 0x3f1   :  { %v1147_v54 = vrot.slane %v1146_v20, 2  ;;  %v1240_v1 = vsel %vm46_vm0, %v1226_v47, 0.0 }
 0x3f2   :  { %v1233_v15 = vadd.f32 %v1232_v14, %v1231_v42  ;;  %v1565_v50 = vadd.f32 %v1564_v22, %v1563_v61 }
 0x3f3   :  { %v1148_v5 = vadd.f32 %v1147_v54, %v1146_v20 }
 0x3f4   :  { %v1235_v21 = vadd.f32 %v1234_v19, %v1233_v15  ;;  %v1566_v55 = vrot.slane %v1565_v50, 1 }
 0x3f5   :  { %v1149_v32 = vrot.slane %v1148_v5, 1 }
 0x3f6   :  { %v1237_v49 = vadd.f32 %v1236_v62, %v1235_v21  ;;  %v1567_v57 = vadd.f32 %v1566_v55, %v1565_v50 }
 0x3f7   :  { %v1150_v15 = vadd.f32 %v1149_v32, %v1148_v5 }
 0x3f8   :  { %v1239_v27 = vadd.f32 %v1238_v51, %v1237_v49  ;;  %v3053_v8 = vmul.f32 0.015625, %v1567_v57 }
 0x3f9   :  { %v1151_v51 = vmul.f32 0.015625, %v1150_v15 }
 0x3fa   :  { %v1241_v4 = vadd.f32 %v1240_v1, %v1239_v27  ;;  %v1569_v9 = vsub.f32 %v2973_v58, %v3053_v8  ;;  %v1570_v24 = vsub.f32 %v2970_v46, %v3053_v8  ;;  %v1571_v25 = vsub.f32 %v2992_v3, %v3053_v8 }
 0x3fb   :  { %v1572_v30 = vsub.f32 %v2989_v2, %v3053_v8  ;;  %v1573_v37 = vsub.f32 %v2996_v6, %v3053_v8  ;;  %v1574_v43 = vsub.f32 %v3003_v28, %v3053_v8  ;;  %v1575_v19 = vsub.f32 %v3013_v13, %v3053_v8 }
 0x3fc   :  { %v1242_v0 = vrot.slane %v1241_v4, 4  ;;  %v1577_v35 = vmul.f32 %v1569_v9, %v1569_v9  ;;  %v1578_v36 = vmul.f32 %v1570_v24, %v1570_v24  ;;  %v1579_v41 = vmul.f32 %v1571_v25, %v1571_v25 }
 0x3fd   :  { %v1580_v45 = vmul.f32 %v1572_v30, %v1572_v30  ;;  %v1581_v20 = vmul.f32 %v1573_v37, %v1573_v37  ;;  %v1576_v62 = vsub.f32 %v3019_v60, %v3053_v8  ;;  %v1582_v49 = vmul.f32 %v1574_v43, %v1574_v43  ;;  %v1913_v37 = vld [vmem:[%s3184_s6 + $0x1] sm:$0x1] }
 0x3fe   :  { %v1243_v59 = vadd.f32 %v1242_v0, %v1241_v4  ;;  %v1585_v12 = vsel %vm46_vm0, %v1577_v35, 0.0  ;;  %v1586_v14 = vsel %vm46_vm0, %v1578_v36, 0.0  ;;  %v1588_v21 = vsel %vm46_vm0, %v1579_v41, 0.0 }
 0x3ff   :  { %v1587_v18 = vadd.f32 %v1586_v14, %v1585_v12  ;;  %v1590_v50 = vsel %vm46_vm0, %v1580_v45, 0.0  ;;  %v1583_v55 = vmul.f32 %v1575_v19, %v1575_v19  ;;  %v1592_v1 = vsel %vm46_vm0, %v1581_v20, 0.0  ;;  %v1914_v14 = vld [vmem:[%s3185_s7 + $0x1] sm:$0x1]  ;;  %v1152_v20 = vld [vmem:[%s3184_s6] sm:$0x1] }
 0x400   :  { %v1244_v33 = vrot.slane %v1243_v59, 2  ;;  %v1584_v5 = vmul.f32 %v1576_v62, %v1576_v62  ;;  %v1594_v0 = vsel %vm46_vm0, %v1582_v49, 0.0  ;;  %v1160_v30 = vlaneseq }
 0x401   :  { %v1589_v47 = vadd.f32 %v1588_v21, %v1587_v18  ;;  %v1596_v24 = vsel %vm46_vm0, %v1583_v55, 0.0 }
 0x402   :  { %v1245_v42 = vadd.f32 %v1244_v33, %v1243_v59  ;;  %v1153_v59 = vadd.f32 1e-05, %v1151_v51  ;;  %v1598_v32 = vsel %vm46_vm0, %v1584_v5, 0.0  ;;  %v1161_v36 = vshrl.u32 %v1160_v30, 7 }
 0x403   :  { %v1591_v27 = vadd.f32 %v1590_v50, %v1589_v47 }
 0x404   :  { %v1246_v61 = vrot.slane %v1245_v42, 1  ;;  %v3082_v45 = vsub.s32 0, %v1161_v36 }
 0x405   :  { %v1593_v57 = vadd.f32 %v1592_v1, %v1591_v27 }
 0x406   :  { %v1247_v22 = vadd.f32 %v1246_v61, %v1245_v42 }
 0x407   :  { %v1595_v9 = vadd.f32 %v1594_v0, %v1593_v57 }
 0x408   :  { %v1248_v54 = vmul.f32 0.015625, %v1247_v22 }
 0x409   :  { %v1597_v25 = vadd.f32 %v1596_v24, %v1595_v9 }
 0x40a   :  { %v1251_v4 = vadd.f32 1e-05, %v1248_v54  ;;  %v1936_v54 = vld [vmem:[%s3186_s8 + $0x28] sm:$0xff] }
 0x40b   :  { %v1599_v33 = vadd.f32 %v1598_v32, %v1597_v25 }
 0x40c   :  { %2421 = vrsqrt.f32 %v1251_v4 }
 0x40d   :  { %2423 = vrsqrt.f32 %v1153_v59  ;;  %v1600_v35 = vrot.slane %v1599_v33, 4 }
 0x40f   :  { %v1601_v41 = vadd.f32 %v1600_v35, %v1599_v33 }
 0x411   :  { %v1602_v43 = vrot.slane %v1601_v41, 2 }
 0x413   :  { %v1603_v15 = vadd.f32 %v1602_v43, %v1601_v41 }
 0x415   :  { %v1604_v21 = vrot.slane %v1603_v15, 1 }
 0x416   :  { %v2422_v42 = vpop.eup %2421 }
 0x417   :  { %v1253_v12 = vmul.f32 %v2422_v42, %v1913_v37  ;;  %v2424_v19 = vpop.eup %2423  ;;  %v1605_v47 = vadd.f32 %v1604_v21, %v1603_v15 }
 0x418   :  { %v1155_v62 = vmul.f32 %v2424_v19, %v1152_v20 }
 0x419   :  { %v1256_v61 = vmul.f32 %v1253_v12, %v3024_v48  ;;  %v1262_v18 = vrot.slane %v1253_v12, %v3082_v45  ;;  %v1935_v48 = vld [vmem:[%s3186_s8 + $0x20] sm:$0xff]  ;;  %v1606_v27 = vmul.f32 0.015625, %v1605_v47 }
 0x41a   :  { %v2382_v5 = vpack.c.bf16 %v1936_v54, %v1935_v48  ;;  %v1157_v0 = vmul.f32 %v1155_v62, %v2954_v34  ;;  %v1163_v30 = vrot.slane %v1155_v62, %v3082_v45 }
 0x41b   :  { %v1257_v22 = vsub.f32 %v1914_v14, %v1256_v61  ;;  %v1264_v50 = vmul.f32 %v1262_v18, %v2925_v23  ;;  %v1265_v51 = vmul.f32 %v1262_v18, %v2920_v63  ;;  %v1266_v4 = vmul.f32 %v1262_v18, %v2935_v53  ;;  %v1156_v23 = vld [vmem:[%s3185_s7] sm:$0x1] }
 0x41c   :  { %v1609_v57 = vadd.f32 1e-05, %v1606_v27  ;;  %v1267_v59 = vmul.f32 %v1262_v18, %v2932_v52  ;;  %v1268_v53 = vmul.f32 %v1262_v18, %v2942_v56  ;;  %v1158_v34 = vsub.f32 %v1156_v23, %v1157_v0 }
 0x41d   :  { %v1276_v49 = vrot.slane %v1257_v22, %v3082_v45  ;;  %v1269_v25 = vmul.f32 %v1262_v18, %v2945_v7  ;;  %v1270_v32 = vmul.f32 %v1262_v18, %v2950_v26  ;;  %v1271_v35 = vmul.f32 %v1262_v18, %v2967_v44 }
 0x41e   :  { %2425 = vrsqrt.f32 %v1609_v57  ;;  %v1177_v33 = vrot.slane %v1158_v34, %v3082_v45  ;;  %v1165_v7 = vmul.f32 %v1163_v30, %v2876_v31  ;;  %v1166_v42 = vmul.f32 %v1163_v30, %v2873_v29  ;;  %v1934_v31 = vld [vmem:[%s3185_s7 + $0x2] sm:$0x1] }
 0x41f   :  { %v1278_v55 = vadd.f32 %v1276_v49, %v1264_v50  ;;  %v1279_v1 = vadd.f32 %v1276_v49, %v1265_v51  ;;  %v1280_v63 = vadd.f32 %v1276_v49, %v1266_v4  ;;  %v1281_v9 = vadd.f32 %v1276_v49, %v1267_v59 }
 0x420   :  { %v1282_v24 = vadd.f32 %v1276_v49, %v1268_v53  ;;  %v1283_v52 = vadd.f32 %v1276_v49, %v1269_v25  ;;  %v1284_v56 = vadd.f32 %v1276_v49, %v1270_v32  ;;  %v1285_v26 = vadd.f32 %v1276_v49, %v1271_v35 }
 0x421   :  { %2270 = vmatprep.mubr.msk.f32.mxu0 %vm46_vm0, %v1278_v55  ;;  %v1179_v41 = vadd.f32 %v1177_v33, %v1165_v7  ;;  %v1167_v43 = vmul.f32 %v1163_v30, %v2894_v40  ;;  %v1180_v12 = vadd.f32 %v1177_v33, %v1166_v42  ;;  %v1168_v15 = vmul.f32 %v1163_v30, %v2891_v39 }
 0x422   :  { %2271 = vmatmul.mubr.msk.f32.vlgmr.msra.gmra.mrb[16].mxu0 %vm46_vm0, %v1279_v1  ;;  %v1169_v29 = vmul.f32 %v1163_v30, %v2905_v11  ;;  %v1171_v19 = vmul.f32 %v1163_v30, %v2915_v17  ;;  %v1172_v11 = vmul.f32 %v1163_v30, %v2912_v16 }
 0x423   :  { %2273 = vmatprep.mubr.msk.f32.mxu0 %vm46_vm0, %v1280_v63  ;;  %2381 = vmatpush3.bf16.msra.mxu0 %v2888_v38  ;;  %v1933_v38 = vld [vmem:[%s3184_s6 + $0x2] sm:$0x1]  ;;  %v1181_v44 = vadd.f32 %v1177_v33, %v1167_v43  ;;  %v1182_v61 = vadd.f32 %v1177_v33, %v1168_v15 }
 0x424   :  { %2383 = vmatprep.subr.bf16.mxu0 %v2382_v5  ;;  %v1183_v40 = vadd.f32 %v1177_v33, %v1169_v29  ;;  %v1185_v39 = vadd.f32 %v1177_v33, %v1171_v19  ;;  %v1186_v62 = vadd.f32 %v1177_v33, %v1172_v11 }
 0x426   :  { %2274 = vmatmul.mubr.msk.f32.gmra.mrb[18].mxu0 %vm46_vm0, %v1281_v9 }
 0x427   :  { %2276 = vmatprep.mubr.msk.f32.mxu0 %vm46_vm0, %v1282_v24 }
 0x428   :  { %v2426_v36 = vpop.eup %2425 }
 0x429   :  { %v1611_v37 = vmul.f32 %v2426_v36, %v1933_v38 }
 0x42a   :  { %2277 = vmatmul.mubr.msk.f32.gmra.mrb[20].mxu0 %vm46_vm0, %v1283_v52 }
 0x42b   :  { %2279 = vmatprep.mubr.msk.f32.mxu0 %vm46_vm0, %v1284_v56  ;;  %v1614_v14 = vmul.f32 %v1611_v37, %v3053_v8  ;;  %v1170_v8 = vmul.f32 %v1163_v30, %v2902_v10  ;;  %v1620_v20 = vrot.slane %v1611_v37, %v3082_v45 }
 0x42d   :  { %v1615_v18 = vsub.f32 %v1934_v31, %v1614_v14  ;;  %v1184_v21 = vadd.f32 %v1177_v33, %v1170_v8  ;;  %v1622_v47 = vmul.f32 %v1620_v20, %v2973_v58  ;;  %v1623_v17 = vmul.f32 %v1620_v20, %v2970_v46 }
 0x42e   :  { %2280 = vmatmul.mubr.msk.f32.gmra.mrb[22].mxu0 %vm46_vm0, %v1285_v26  ;;  %v1624_v49 = vmul.f32 %v1620_v20, %v2992_v3  ;;  %v1625_v16 = vmul.f32 %v1620_v20, %v2989_v2  ;;  %v1626_v58 = vmul.f32 %v1620_v20, %v2996_v6  ;;  %v1627_v46 = vmul.f32 %v1620_v20, %v3003_v28  ;;  %v1945_v6 = vld [vmem:[%s3187_s9] ss:$0 sm:$0xff]  ;;  %s2427_s9 = scalar_lea.vmem %s1813_s3, 1024 }
 0x42f   :  { %2286 = vmatprep.mubr.msk.f32.mxu0 %vm46_vm0, %v1179_v41  ;;  %v1634_v22 = vrot.slane %v1615_v18, %v3082_v45  ;;  %v1628_v54 = vmul.f32 %v1620_v20, %v3013_v13  ;;  %v1629_v2 = vmul.f32 %v1620_v20, %v3019_v60  ;;  %p2428_p0 = scmp.ne.s32.totalorder %s1813_s3, %s2427_s9  ;;  %p2433_p2 = scmp.lt.s32.totalorder %s2427_s9, %s2427_s9 }
 0x431   :  { %v1636_v10 = vadd.f32 %v1634_v22, %v1622_v47  ;;  %v1637_v50 = vadd.f32 %v1634_v22, %v1623_v17  ;;  %v1638_v45 = vadd.f32 %v1634_v22, %v1624_v49  ;;  %v1639_v51 = vadd.f32 %v1634_v22, %v1625_v16  ;;  %p2434_p3 = por %p2433_p2, %p2432_p1 }
 0x432   :  { %2287 = vmatmul.mubr.msk.f32.vlgmr.msra.gmra.mrb[16].mxu0 %vm46_vm0, %v1180_v12  ;;  %v1640_v48 = vadd.f32 %v1634_v22, %v1626_v58  ;;  %v1641_v3 = vadd.f32 %v1634_v22, %v1627_v46  ;;  %v1642_v27 = vadd.f32 %v1634_v22, %v1628_v54  ;;  %v1643_v55 = vadd.f32 %v1634_v22, %v1629_v2 }
 0x433   :  { %2289 = vmatprep.mubr.msk.f32.mxu0 %vm46_vm0, %v1181_v44  ;;  %2385 = vmatpush3.bf16.msra.mxu0 %v2382_v5  ;;  %p2435_p4 = pnand %p2434_p3, %p2428_p0 }
 0x436   :  { %2290 = vmatmul.mubr.msk.f32.gmra.mrb[18].mxu0 %vm46_vm0, %v1182_v61 }
 0x437   :  { %2292 = vmatprep.mubr.msk.f32.mxu0 %vm46_vm0, %v1183_v40 }
 0x43a   :  { %2293 = vmatmul.mubr.msk.f32.gmra.mrb[20].mxu0 %vm46_vm0, %v1184_v21 }
 0x43b   :  { %2295 = vmatprep.mubr.msk.f32.mxu0 %vm46_vm0, %v1185_v39 }
 0x43e   :  { %2296 = vmatmul.mubr.msk.f32.gmra.mrb[22].mxu0 %vm46_vm0, %v1186_v62 }
 0x43f   :  { %2302 = vmatprep.mubr.msk.f32.mxu0 %vm46_vm0, %v1636_v10 }
 0x442   :  { %2303 = vmatmul.mubr.msk.f32.vlgmr.msra.gmra.mrb[16].mxu0 %vm46_vm0, %v1637_v50 }
 0x443   :  { %2305 = vmatprep.mubr.msk.f32.mxu0 %vm46_vm0, %v1638_v45 }
 0x446   :  { %2306 = vmatmul.mubr.msk.f32.gmra.mrb[18].mxu0 %vm46_vm0, %v1639_v51 }
 0x447   :  { %2308 = vmatprep.mubr.msk.f32.mxu0 %vm46_vm0, %v1640_v48 }
 0x44a   :  { %2309 = vmatmul.mubr.msk.f32.gmra.mrb[20].mxu0 %vm46_vm0, %v1641_v3 }
 0x44b   :  { %2311 = vmatprep.mubr.msk.f32.mxu0 %vm46_vm0, %v1642_v27 }
 0x44e   :  { %2312 = vmatmul.mubr.msk.f32.gmra.mrb[22].mxu0 %vm46_vm0, %v1643_v55 }
 0x515   :  { %v2304_v28 = vpop.f32.mrb[16].mxu0 }
 0x516   :  { %v1792_v1 = vadd.f32 %v2304_v28, %v1945_v6  ;;  %v1737_v13 = vpop.f32.mrb[17].mxu0 }
 0x517   :  { %v1791_v4 = vadd.f32 %v1945_v6, %v1737_v13 }
 0x518   :  { %1800 = vst [vmem:[#allocation2 + $0x8] sm:$0xff] %v1792_v1 }
 0x519   :  { %1799 = vst [vmem:[#allocation2] sm:$0xff] %v1791_v4  ;;  %v2307_v57 = vpop.f32.mrb[18].mxu0 }
 0x51a   :  { %v1794_v5 = vadd.f32 %v2307_v57, %v1945_v6  ;;  %v1747_v0 = vpop.f32.mrb[19].mxu0 }
 0x51b   :  { %v1793_v63 = vadd.f32 %v1945_v6, %v1747_v0 }
 0x51c   :  { %1802 = vst [vmem:[#allocation2 + $0x18] sm:$0xff] %v1794_v5 }
 0x51d   :  { %1801 = vst [vmem:[#allocation2 + $0x10] sm:$0xff] %v1793_v63  ;;  %v2310_v60 = vpop.f32.mrb[20].mxu0 }
 0x51e   :  { %v1796_v23 = vadd.f32 %v2310_v60, %v1945_v6  ;;  %v1757_v59 = vpop.f32.mrb[21].mxu0 }
 0x51f   :  { %v1795_v53 = vadd.f32 %v1945_v6, %v1757_v59 }
 0x520   :  { %1804 = vst [vmem:[#allocation2 + $0x28] sm:$0xff] %v1796_v23 }
 0x521   :  { %1803 = vst [vmem:[#allocation2 + $0x20] sm:$0xff] %v1795_v53  ;;  %v2313_v9 = vpop.f32.mrb[22].mxu0 }
 0x522   :  { %v1798_v34 = vadd.f32 %v2313_v9, %v1945_v6  ;;  %v1767_v24 = vpop.f32.mrb[23].mxu0 }
 0x523   :  { %v1797_v25 = vadd.f32 %v1945_v6, %v1767_v24 }
 0x524   :  { %1806 = vst [vmem:[#allocation2 + $0x38] sm:$0xff] %v1798_v34 }
 0x525   :  { %1805 = vst [vmem:[#allocation2 + $0x30] sm:$0xff] %v1797_v25 }
 0x526   :  { %2438 = shalt.err (!%p2435_p4)
}
 0x527   :  { %s2439_s19 = scalar_lea.hbm %s3188_s10, 1024 }
 0x528   :  { %p2440_p5 = scmp.ne.s32.totalorder %s3188_s10, %s2439_s19  ;;  %p2443_p6 = scmp.lt.u32.totalorder %s2439_s19, %s3188_s10 }
 0x52a   :  { %p2445_p7 = pnand %p2443_p6, %p2440_p5 }
 0x52c   :  { %2448 = shalt.err (!%p2445_p7)
}
 0x52d   :  { %s2452_s5 = smov 128   ;;  %s2453_s2 = smov 8  }
 0x52e   :  { %1818 = dma.vmem_to_hbm [thread:$0]  %s1813_s3, 1024, %s3188_s10, [#allocation3], %s2452_s5, %s2452_s5, %s2453_s2  }
 0x52f   :  { %2449 = dma.done.wait [#allocation3], 1024  }
 0x530   :  { %2450 = vsyncadd [#allocation3], 4294966272 }
 0x531   :  { %1822 = vsyncpa [#allocation3], 1 }

</bundles_post_ra>
